<compile_context>
chip_gen: v7x
topology: tpu7x:2x2x1
jax: 0.10.0
libtpu: 0.0.40
codegen_flags: <defaults>
</compile_context>

<pallas_src>
import functools

import jax
import jax.numpy as jnp
from jax.experimental import pallas as pl
from jax.experimental.pallas import tpu as pltpu


def _branch_attention_kernel(x_ref, w1t_ref, w2t_ref, o_ref, sum_acc, max_acc,
                             *, hw_total, hw_tile, needs_mask):
    # x_ref  : (n_tile, C, hw_tile)   input activations (NCHW layout, HW on lanes)
    # w1t_ref: (C, hidden)            fc1 weight, transposed
    # w2t_ref: (hidden, 2)            fc2 weight, transposed
    # o_ref  : (n_tile, 2)
    # sum_acc/max_acc: (n_tile, C) f32 VMEM scratch accumulators
    k = pl.program_id(1)

    @pl.when(k == 0)
    def _init():
        sum_acc[...] = jnp.zeros_like(sum_acc)
        max_acc[...] = jnp.full_like(max_acc, -jnp.inf)

    # Single traversal of the tile: both partial sum and partial max from one load.
    x = x_ref[...].astype(jnp.float32)                       # (n_tile, C, hw_tile)
    if needs_mask:
        # 1-lane iota, broadcast by jnp.where (cheap; VPU work is free filler here).
        pos = jax.lax.broadcasted_iota(jnp.int32, (1, 1, x.shape[-1]), 2) + k * hw_tile
        valid = pos < hw_total
        x_sum = jnp.where(valid, x, 0.0)
        x_max = jnp.where(valid, x, -jnp.inf)
    else:
        x_sum = x
        x_max = x

    sum_acc[...] = sum_acc[...] + jnp.sum(x_sum, axis=-1)            # (n_tile, C)
    max_acc[...] = jnp.maximum(max_acc[...], jnp.max(x_max, axis=-1))

    @pl.when(k == pl.num_programs(1) - 1)
    def _finalize():
        avg = sum_acc[...] * (1.0 / float(hw_total))   # divide by TRUE H*W
        mx = max_acc[...]
        w1t = w1t_ref[...]
        # fc2 is linear, so fc2(relu(fc1(avg))) + fc2(relu(fc1(mx)))
        #   == (relu(avg@W1t) + relu(mx@W1t)) @ W2t   — no concatenate needed.
        h = (jnp.maximum(jnp.dot(avg, w1t, preferred_element_type=jnp.float32), 0.0)
             + jnp.maximum(jnp.dot(mx, w1t, preferred_element_type=jnp.float32), 0.0))
        y = jnp.dot(h, w2t_ref[...], preferred_element_type=jnp.float32)  # (n_tile, 2)
        o_ref[...] = jax.nn.sigmoid(y).astype(o_ref.dtype)


def _pick_tiles(N, C, HW, itemsize, *, hw_tile=None, budget_bytes=4 << 20):
    """Pick (n_tile, hw_tile).

    n_tile divides N and is either N or a multiple of 8 (output block rule).
    hw_tile is the full HW (preferred: contiguous DMA, one reduction step) or a
    multiple of 128 that keeps one input block under ~4 MiB (double-buffered by
    BlockSpec, so well inside every generation's scoped-VMEM default)."""
    cands = sorted(d for d in range(1, N + 1) if N % d == 0 and (d == N or d % 8 == 0))
    n_min = cands[0]
    if hw_tile is None:
        if HW <= 128 or n_min * C * HW * itemsize <= budget_bytes:
            hw_tile = HW
        else:
            fit = (budget_bytes // (n_min * C * itemsize)) // 128 * 128
            hw_tile = int(max(128, min(fit, (HW // 128) * 128)))
    fitting = [d for d in cands if d * C * hw_tile * itemsize <= budget_bytes]
    n_tile = max(fitting) if fitting else n_min
    return n_tile, hw_tile


def branch_attention(x_nchw, fc1_w, fc2_w, *, hw_tile=None):
    """x_nchw: (N, C, H, W); fc1_w: (C//r, C, 1, 1); fc2_w: (2, C//r, 1, 1).
    Returns (N, 2, 1, 1), matching the PyTorch module."""
    N, C, H, W = x_nchw.shape
    hidden = fc1_w.shape[0]
    HW = H * W

    # Free reshape: keep NCHW layout, HW becomes the (contiguous) lane axis.
    x = x_nchw.reshape(N, C, HW)
    w1t = fc1_w.reshape(hidden, C).T.astype(jnp.float32)   # (C, hidden)
    w2t = fc2_w.reshape(2, hidden).T.astype(jnp.float32)   # (hidden, 2)

    n_tile, hw_tile = _pick_tiles(N, C, HW, jnp.dtype(x.dtype).itemsize, hw_tile=hw_tile)
    num_hw_tiles = pl.cdiv(HW, hw_tile)
    needs_mask = (HW % hw_tile) != 0
    grid = (N // n_tile, num_hw_tiles)

    kernel = functools.partial(
        _branch_attention_kernel,
        hw_total=HW, hw_tile=hw_tile, needs_mask=needs_mask)

    out = pl.pallas_call(
        kernel,
        out_shape=jax.ShapeDtypeStruct((N, 2), jnp.float32),
        grid=grid,
        in_specs=[
            pl.BlockSpec((n_tile, C, hw_tile), lambda i, k: (i, 0, k)),
            pl.BlockSpec((C, hidden), lambda i, k: (0, 0)),
            pl.BlockSpec((hidden, 2), lambda i, k: (0, 0)),
        ],
        out_specs=pl.BlockSpec((n_tile, 2), lambda i, k: (i, 0)),
        scratch_shapes=[
            pltpu.VMEM((n_tile, C), jnp.float32),   # running sum
            pltpu.VMEM((n_tile, C), jnp.float32),   # running max
        ],
        compiler_params=pltpu.CompilerParams(
            dimension_semantics=("parallel", "arbitrary")),
    )(x, w1t, w2t)

    return out.reshape(N, 2, 1, 1)


def _reference(x, fc1_w, fc2_w):
    hidden, C = fc1_w.shape[0], fc1_w.shape[1]
    avg = jnp.mean(x.astype(jnp.float32), axis=(2, 3))
    mx = jnp.max(x.astype(jnp.float32), axis=(2, 3))
    w1 = fc1_w.reshape(hidden, C).astype(jnp.float32)
    w2 = fc2_w.reshape(2, hidden).astype(jnp.float32)

    def mlp(p):
        return jnp.maximum(p @ w1.T, 0.0) @ w2.T

    N = x.shape[0]
    return jax.nn.sigmoid(mlp(avg) + mlp(mx)).reshape(N, 2, 1, 1)


if __name__ == "__main__":
    ratio = 16
    key = jax.random.PRNGKey(0)
    kx1, kx2, k1, k2 = jax.random.split(key, 4)

    # Case 1: small canonical shapes (single block, grid (1, 1), full-HW tile).
    N, C, H, W = 2, 32, 8, 8
    hidden = C // ratio  # 2
    x1 = jax.random.normal(kx1, (N, C, H, W), dtype=jnp.float32)
    fc1_w = 0.1 * jax.random.normal(k1, (hidden, C, 1, 1), dtype=jnp.float32)
    fc2_w = 0.1 * jax.random.normal(k2, (2, hidden, 1, 1), dtype=jnp.float32)

    out1 = branch_attention(x1, fc1_w, fc2_w)
    jax.block_until_ready(out1)
    ref1 = _reference(x1, fc1_w, fc2_w)
    assert jnp.allclose(out1, ref1, atol=1e-5, rtol=1e-5), "case1 mismatch vs reference"

    # Case 2: exercise multi-step HW reduction + remainder masking
    # (HW = 144 with hw_tile = 128 -> 2 HW steps, last one partially masked).
    H2, W2 = 12, 12
    x2 = jax.random.normal(kx2, (N, C, H2, W2), dtype=jnp.float32)
    out2 = branch_attention(x2, fc1_w, fc2_w, hw_tile=128)
    jax.block_until_ready(out2)
    ref2 = _reference(x2, fc1_w, fc2_w)
    assert jnp.allclose(out2, ref2, atol=1e-5, rtol=1e-5), "case2 mismatch vs reference"

    print("KERNEL_OK")
</pallas_src>

<mosaic_0001>
module attributes {stable_mosaic.version = 11 : i64} {
  func.func @_branch_attention_kernel(%arg0: i32, %arg1: i32, %arg2: memref<2x32x64xf32, #tpu.memory_space<vmem>>, %arg3: memref<32x2xf32, #tpu.memory_space<vmem>>, %arg4: memref<2x2xf32, #tpu.memory_space<vmem>>, %arg5: memref<2x2xf32, #tpu.memory_space<vmem>>, %arg6: memref<2x32xf32, #tpu.memory_space<vmem>>, %arg7: memref<2x32xf32, #tpu.memory_space<vmem>>) attributes {dimension_semantics = [#tpu.dimension_semantics<parallel>, #tpu.dimension_semantics<arbitrary>], iteration_bounds = array<i64: 1, 1>, scalar_prefetch = 0 : i64, scratch_operands = 2 : i64, tpu.core_type = #tpu.core_type<tc>, window_params = [{transform_indices = @transform_0, window_bounds = array<i64: 2, 32, 64>}, {pipeline_mode = #tpu.pipeline_mode<synchronous>, transform_indices = @transform_1, window_bounds = array<i64: 32, 2>}, {pipeline_mode = #tpu.pipeline_mode<synchronous>, transform_indices = @transform_2, window_bounds = array<i64: 2, 2>}, {transform_indices = @transform_3, window_bounds = array<i64: 2, 2>}]} {
    %c0_i32 = arith.constant 0 : i32
    %0 = arith.cmpi eq, %arg1, %c0_i32 : i32
    %1 = arith.extui %0 : i1 to i32
    %c0_i32_0 = arith.constant 0 : i32
    %2 = arith.cmpi ne, %1, %c0_i32_0 : i32
    scf.if %2 {
      %cst_14 = arith.constant 0.000000e+00 : f32
      %15 = vector.broadcast %cst_14 : f32 to vector<2x32xf32>
      %c0_15 = arith.constant 0 : index
      %c0_16 = arith.constant 0 : index
      %16 = vector.load %arg6[%c0_15, %c0_16] : memref<2x32xf32, #tpu.memory_space<vmem>>, vector<2x32xf32>
      tpu.vector_store %arg6[%c0_15, %c0_16], %15 {strides = array<i32>} : memref<2x32xf32, #tpu.memory_space<vmem>>, vector<2x32xf32>,
      %cst_17 = arith.constant 0xFF800000 : f32
      %17 = vector.broadcast %cst_17 : f32 to vector<2x32xf32>
      %c0_18 = arith.constant 0 : index
      %c0_19 = arith.constant 0 : index
      %18 = vector.load %arg7[%c0_18, %c0_19] : memref<2x32xf32, #tpu.memory_space<vmem>>, vector<2x32xf32>
      tpu.vector_store %arg7[%c0_18, %c0_19], %17 {strides = array<i32>} : memref<2x32xf32, #tpu.memory_space<vmem>>, vector<2x32xf32>,
    } else {
    }
    %c0 = arith.constant 0 : index
    %c0_1 = arith.constant 0 : index
    %c0_2 = arith.constant 0 : index
    %3 = vector.load %arg2[%c0, %c0_1, %c0_2] : memref<2x32x64xf32, #tpu.memory_space<vmem>>, vector<2x32x64xf32>
    %c0_3 = arith.constant 0 : index
    %c0_4 = arith.constant 0 : index
    %4 = vector.load %arg6[%c0_3, %c0_4] : memref<2x32xf32, #tpu.memory_space<vmem>>, vector<2x32xf32>
    %cst = arith.constant dense<0.000000e+00> : vector<2x32xf32>
    %5 = vector.multi_reduction <add>, %3, %cst [2] : vector<2x32x64xf32> to vector<2x32xf32>
    %6 = arith.addf %4, %5 : vector<2x32xf32>
    %c0_5 = arith.constant 0 : index
    %c0_6 = arith.constant 0 : index
    %7 = vector.load %arg6[%c0_5, %c0_6] : memref<2x32xf32, #tpu.memory_space<vmem>>, vector<2x32xf32>
    tpu.vector_store %arg6[%c0_5, %c0_6], %6 {strides = array<i32>} : memref<2x32xf32, #tpu.memory_space<vmem>>, vector<2x32xf32>,
    %c0_7 = arith.constant 0 : index
    %c0_8 = arith.constant 0 : index
    %8 = vector.load %arg7[%c0_7, %c0_8] : memref<2x32xf32, #tpu.memory_space<vmem>>, vector<2x32xf32>
    %cst_9 = arith.constant dense<0xFF800000> : vector<2x32xf32>
    %9 = vector.multi_reduction <maximumf>, %3, %cst_9 [2] : vector<2x32x64xf32> to vector<2x32xf32>
    %10 = arith.maximumf %8, %9 : vector<2x32xf32>
    %c0_10 = arith.constant 0 : index
    %c0_11 = arith.constant 0 : index
    %11 = vector.load %arg7[%c0_10, %c0_11] : memref<2x32xf32, #tpu.memory_space<vmem>>, vector<2x32xf32>
    tpu.vector_store %arg7[%c0_10, %c0_11], %10 {strides = array<i32>} : memref<2x32xf32, #tpu.memory_space<vmem>>, vector<2x32xf32>,
    %c0_i32_12 = arith.constant 0 : i32
    %12 = arith.cmpi eq, %arg1, %c0_i32_12 : i32
    %13 = arith.extui %12 : i1 to i32
    %c0_i32_13 = arith.constant 0 : i32
    %14 = arith.cmpi ne, %13, %c0_i32_13 : i32
    scf.if %14 {
      %c0_14 = arith.constant 0 : index
      %c0_15 = arith.constant 0 : index
      %15 = vector.load %arg6[%c0_14, %c0_15] : memref<2x32xf32, #tpu.memory_space<vmem>>, vector<2x32xf32>
      %cst_16 = arith.constant 1.562500e-02 : f32
      %16 = vector.broadcast %cst_16 : f32 to vector<2x32xf32>
      %17 = arith.mulf %15, %16 : vector<2x32xf32>
      %c0_17 = arith.constant 0 : index
      %c0_18 = arith.constant 0 : index
      %18 = vector.load %arg7[%c0_17, %c0_18] : memref<2x32xf32, #tpu.memory_space<vmem>>, vector<2x32xf32>
      %c0_19 = arith.constant 0 : index
      %c0_20 = arith.constant 0 : index
      %19 = vector.load %arg3[%c0_19, %c0_20] : memref<32x2xf32, #tpu.memory_space<vmem>>, vector<32x2xf32>
      %cst_21 = arith.constant dense<0.000000e+00> : vector<2x2xf32>
      %20 = tpu.matmul %17, %19, %cst_21 {dimension_numbers = #tpu.dot_dimension_numbers<[1], [0], [0], [1], [0, 0, 1, 1], [], []>} : vector<2x32xf32>, vector<32x2xf32>, vector<2x2xf32> -> vector<2x2xf32>
      %cst_22 = arith.constant 0.000000e+00 : f32
      %21 = vector.broadcast %cst_22 : f32 to vector<2x2xf32>
      %22 = arith.maximumf %20, %21 : vector<2x2xf32>
      %cst_23 = arith.constant dense<0.000000e+00> : vector<2x2xf32>
      %23 = tpu.matmul %18, %19, %cst_23 {dimension_numbers = #tpu.dot_dimension_numbers<[1], [0], [0], [1], [0, 0, 1, 1], [], []>} : vector<2x32xf32>, vector<32x2xf32>, vector<2x2xf32> -> vector<2x2xf32>
      %cst_24 = arith.constant 0.000000e+00 : f32
      %24 = vector.broadcast %cst_24 : f32 to vector<2x2xf32>
      %25 = arith.maximumf %23, %24 : vector<2x2xf32>
      %26 = arith.addf %22, %25 : vector<2x2xf32>
      %c0_25 = arith.constant 0 : index
      %c0_26 = arith.constant 0 : index
      %27 = vector.load %arg4[%c0_25, %c0_26] : memref<2x2xf32, #tpu.memory_space<vmem>>, vector<2x2xf32>
      %cst_27 = arith.constant dense<0.000000e+00> : vector<2x2xf32>
      %28 = tpu.matmul %26, %27, %cst_27 {dimension_numbers = #tpu.dot_dimension_numbers<[1], [0], [0], [1], [0, 0, 1, 1], [], []>} : vector<2x2xf32>, vector<2x2xf32>, vector<2x2xf32> -> vector<2x2xf32>
      %29 = arith.negf %28 : vector<2x2xf32>
      %30 = math.exp %29 : vector<2x2xf32>
      %cst_28 = arith.constant 1.000000e+00 : f32
      %31 = vector.broadcast %cst_28 : f32 to vector<2x2xf32>
      %32 = arith.addf %31, %30 : vector<2x2xf32>
      %33 = arith.divf %31, %32 : vector<2x2xf32>
      %c0_29 = arith.constant 0 : index
      %c0_30 = arith.constant 0 : index
      %34 = vector.load %arg5[%c0_29, %c0_30] : memref<2x2xf32, #tpu.memory_space<vmem>>, vector<2x2xf32>
      tpu.vector_store %arg5[%c0_29, %c0_30], %33 {strides = array<i32>} : memref<2x2xf32, #tpu.memory_space<vmem>>, vector<2x2xf32>,
    } else {
    }
    return
  }
  func.func @transform_0(%arg0: i32, %arg1: i32) -> (i32, i32, i32) {
    %c0_i32 = arith.constant 0 : i32
    %c0_i32_0 = arith.constant 0 : i32
    return %arg0, %c0_i32, %arg1 : i32, i32, i32
  }
  func.func @transform_1(%arg0: i32, %arg1: i32) -> (i32, i32) {
    %c0_i32 = arith.constant 0 : i32
    %c0_i32_0 = arith.constant 0 : i32
    %c0_i32_1 = arith.constant 0 : i32
    return %c0_i32, %c0_i32_0 : i32, i32
  }
  func.func @transform_2(%arg0: i32, %arg1: i32) -> (i32, i32) {
    %c0_i32 = arith.constant 0 : i32
    %c0_i32_0 = arith.constant 0 : i32
    %c0_i32_1 = arith.constant 0 : i32
    return %c0_i32, %c0_i32_0 : i32, i32
  }
  func.func @transform_3(%arg0: i32, %arg1: i32) -> (i32, i32) {
    %c0_i32 = arith.constant 0 : i32
    %c0_i32_0 = arith.constant 0 : i32
    return %arg0, %c0_i32 : i32, i32
  }
}

</mosaic_0001>

<bundles_post_ra>
// kernel: tpu_custom_call.1
= control target key start
LH: loop header
LB: loop body
LE: loop exit
PB: predicated region body
PF: predicated region fallthrough
CT: control target
= control target key end

     0   :  { %8 = vsyncpa [#allocation5], 0  ;;  %s694_s0 = inlined_call_operand.hbm [shape: f32[2,32,64], index: 0, kind: input, shape index: {}]   ;;  %s695_s1 = inlined_call_operand.vmem [shape: f32[32,2], index: 1, kind: input, shape index: {}]   ;;  %s696_s2 = inlined_call_operand.vmem [shape: f32[2,2], index: 2, kind: input, shape index: {}]   ;;  %s697_s3 = inlined_call_operand.hbm [shape: f32[2,2], index: 3, kind: output, shape index: {}]  }
   0x1   :  { %9 = vsyncpa [#allocation6], 0  ;;  %s583_s12 = smov [#allocation4]   ;;  %s535_s16 = scalar_lea.hbm %s694_s0, 1024 }
   0x2   :  { %s15_s13 = sshll.u32 %s583_s12, 4  ;;  %p536_p0 = scmp.ne.s32.totalorder %s694_s0, %s535_s16  ;;  %s16_s13 = int_to_ptr.vmem [resolvable:$true] %s15_s13 }
   0x3   :  { %p539_p1 = scmp.lt.u32.totalorder %s535_s16, %s694_s0 }
   0x5   :  { %p541_p2 = pnand %p539_p1, %p536_p0 }
   0x7   :  { %544 = shalt.err (!%p541_p2)
}
   0x8   :  { %s545_s21 = scalar_lea.vmem %s16_s13, 1024  ;;  %p550_p4 = scmp.lt.s32.totalorder %s16_s13, %s16_s13 }
   0x9   :  { %p546_p3 = scmp.ne.s32.totalorder %s16_s13, %s545_s21  ;;  %p551_p5 = scmp.lt.s32.totalorder %s545_s21, %s545_s21 }
   0xb   :  { %p552_p6 = por %p551_p5, %p550_p4 }
   0xd   :  { %p553_p7 = pnand %p552_p6, %p546_p3 }
   0xf   :  { %556 = shalt.err (!%p553_p7)
}
  0x10   :  { %s584_s22 = smov 128   ;;  %s585_s23 = smov 8  }
  0x11   :  { %21 = dma.hbm_to_vmem [thread:$0]  %s694_s0, 1024, %s16_s13, [#allocation5], %s584_s22, %s584_s22, %s585_s23  }
  0x12   :  { %579 = dma.done.wait [#allocation5], 1024  }
  0x13   :  { %580 = vsyncadd [#allocation5], 4294966272  ;;  %vm45_vm0 = vcmask 523264   ;;  %v40_v0 = vld [vmem:[#allocation4 + $0x20] sm:$0xff]  ;;  %v41_v2 = vld [vmem:[#allocation4 + $0x28] sm:$0xff]  ;;  %vm33_vm1 = vcmask 254976   ;;  %v78_v33 = vlaneseq }
  0x14   :  { %v36_v1 = vld [vmem:[#allocation4] sm:$0xff]  ;;  %v58_v3 = vsel %vm45_vm0, %v40_v0, 0.0  ;;  %v37_v5 = vld [vmem:[#allocation4 + $0x8] sm:$0xff]  ;;  %v61_v6 = vsel %vm45_vm0, %v41_v2, 0.0  ;;  %v42_v8 = vld [vmem:[#allocation4 + $0x30] sm:$0xff]  ;;  %v146_v18 = vsel %vm45_vm0, %v41_v2, -inf }
  0x15   :  { %v46_v4 = vsel %vm45_vm0, %v36_v1, 0.0  ;;  %59 = vadd.xlane.f32.xlu1 %v58_v3  ;;  %v49_v7 = vsel %vm45_vm0, %v37_v5, 0.0  ;;  %v38_v9 = vld [vmem:[#allocation4 + $0x10] sm:$0xff]  ;;  %v64_v10 = vsel %vm45_vm0, %v42_v8, 0.0  ;;  %v43_v12 = vld [vmem:[#allocation4 + $0x38] sm:$0xff]  ;;  %v134_v16 = vsel %vm45_vm0, %v37_v5, -inf }
  0x16   :  { %47 = vadd.xlane.f32.xlu0 %v46_v4  ;;  %v52_v11 = vsel %vm45_vm0, %v38_v9, 0.0  ;;  %v39_v13 = vld [vmem:[#allocation4 + $0x18] sm:$0xff]  ;;  %v67_v14 = vsel %vm45_vm0, %v43_v12, 0.0  ;;  %v131_v17 = vsel %vm45_vm0, %v36_v1, -inf  ;;  %v143_v19 = vsel %vm45_vm0, %v40_v0, -inf  ;;  %v212_v26 = vld [vmem:[%s695_s1 + $0x8] sm:$0xff] }
  0x17   :  { %v55_v15 = vsel %vm45_vm0, %v39_v13, 0.0  ;;  %v149_v20 = vsel %vm45_vm0, %v42_v8, -inf  ;;  %v137_v21 = vsel %vm45_vm0, %v38_v9, -inf  ;;  %v586_v22 = vmov 0.0   ;;  %v211_v25 = vld [vmem:[%s695_s1] sm:$0xff]  ;;  %v213_v29 = vld [vmem:[%s695_s1 + $0x10] sm:$0xff] }
  0x18   :  { %34 = vst.msk [vmem:[#allocation2] sm:$0x3] %vm33_vm1, %v586_v22  ;;  %v152_v23 = vsel %vm45_vm0, %v43_v12, -inf  ;;  %v140_v24 = vsel %vm45_vm0, %v39_v13, -inf  ;;  %v512_v27 = vpack.c.bf16 %v212_v26, %v211_v25  ;;  %v587_v28 = vmov 0.0|0.0   ;;  %v214_v30 = vld [vmem:[%s695_s1 + $0x18] sm:$0xff] }
  0x19   :  { %62 = vadd.xlane.f32.xlu1 %v61_v6  ;;  %511 = vmatprep.subr.bf16.mxu0 %v587_v28  ;;  %v515_v31 = vpack.c.bf16 %v214_v30, %v213_v29  ;;  %v588_v32 = vmov -inf   ;;  %vm589_vm2 = vmmov 0   ;;  %v79_v34 = vand.u32 127, %v78_v33  ;;  %s590_s7 = smov [#allocation7]  }
  0x1a   :  { %50 = vadd.xlane.f32.xlu0 %v49_v7  ;;  %517 = vmatprep.subr.bf16.mxu1 %v587_v28  ;;  %35 = vst.msk [vmem:[#allocation3] sm:$0x3] %vm33_vm1, %v588_v32  ;;  %v81_v39 = vshrl.u32 %v78_v33, 7  ;;  %vm89_vm3 = vcmask 130112   ;;  %vm96_vm4 = vcmask 195712   ;;  %vm103_vm5 = vcmask 261312  }
  0x1b   :  { %513 = vmatpush3.bf16.msra.mxu0 %v512_v27  ;;  %519 = vmatpush3.bf16.msra.mxu1 %v512_v27  ;;  %v84_v37 = vadd.s32 4294967288, %v79_v34  ;;  %v91_v38 = vadd.s32 4294967280, %v79_v34  ;;  %v98_v43 = vadd.s32 4294967272, %v79_v34  ;;  %vm124_vm6 = vcmask 1041409   ;;  %v365_v33 = vld [vmem:[%s696_s2] sm:$0x3] }
  0x1c   :  { %514 = vmatprep.subr.bf16.mxu0 %v587_v28  ;;  %520 = vmatprep.subr.bf16.mxu1 %v587_v28  ;;  %v82_v45 = vsub.s32 %v79_v34, %v81_v39  ;;  %vm215_vm7 = vcmask 261120   ;;  %vm370_vm8 = vcmask 1041408   ;;  %vm366_vm9 = vcmask 15360   ;;  %s458_s2 = sshll.u32 %s590_s7, 4  ;;  %s459_s2 = int_to_ptr.vmem [resolvable:$true] %s458_s2 }
  0x1d   :  { %65 = vadd.xlane.f32.xlu1 %v64_v10  ;;  %492 = vmatprep.mubr.msk.f32.mxu0 %vm589_vm2, %v586_v22  ;;  %v87_v42 = vsub.s32 %v84_v37, %v81_v39  ;;  %v94_v44 = vsub.s32 %v91_v38, %v81_v39  ;;  %v101_v50 = vsub.s32 %v98_v43, %v81_v39  ;;  %vm450_vm10 = vcmask 9216   ;;  %s557_s8 = scalar_lea.vmem %s459_s2, 32  ;;  %p562_p9 = scmp.lt.s32.totalorder %s459_s2, %s459_s2 }
  0x1e   :  { %53 = vadd.xlane.f32.xlu0 %v52_v11  ;;  %503 = vmatprep.mubr.msk.f32.mxu1 %vm589_vm2, %v586_v22  ;;  %p558_p8 = scmp.ne.s32.totalorder %s459_s2, %s557_s8  ;;  %p563_p10 = scmp.lt.s32.totalorder %s557_s8, %s557_s8 }
  0x1f   :  { %516 = vmatpush3.bf16.msra.mxu0 %v515_v31  ;;  %522 = vmatpush3.bf16.msra.mxu1 %v515_v31  ;;  %v44_v63 = vld [vmem:[#allocation2] sm:$0x3] }
  0x20   :  { %506 = vmatprep.subr.mxu0 %v586_v22  ;;  %p564_p11 = por %p563_p10, %p562_p9 }
  0x21   :  { %68 = vadd.xlane.f32.xlu1 %v67_v14  ;;  %v130_v27 = vld [vmem:[#allocation3] sm:$0x3] }
  0x22   :  { %56 = vadd.xlane.f32.xlu0 %v55_v15  ;;  %p565_p12 = pnand %p564_p11, %p558_p8 }
  0x25   :  { %135 = vmax.xlane.f32.xlu1 %v134_v16 }
  0x26   :  { %132 = vmax.xlane.f32.xlu0 %v131_v17 }
  0x29   :  { %147 = vmax.xlane.f32.xlu1 %v146_v18 }
  0x2a   :  { %144 = vmax.xlane.f32.xlu0 %v143_v19 }
  0x2d   :  { %150 = vmax.xlane.f32.xlu1 %v149_v20 }
  0x2e   :  { %138 = vmax.xlane.f32.xlu0 %v137_v21 }
  0x31   :  { %153 = vmax.xlane.f32.xlu1 %v152_v23 }
  0x32   :  { %141 = vmax.xlane.f32.xlu0 %v140_v24 }
  0xa2   :  { %v60_v35 = vpop.xlane.xlu1 %59 }
  0xa3   :  { %v48_v36 = vpop.xlane.xlu0 %47  ;;  %v108_v53 = vrot.slane %v60_v35, %v82_v45 }
  0xa4   :  { %v83_v54 = vrot.slane %v48_v36, %v82_v45 }
  0xa6   :  { %v63_v40 = vpop.xlane.xlu1 %62 }
  0xa7   :  { %v51_v41 = vpop.xlane.xlu0 %50  ;;  %v112_v48 = vrot.slane %v63_v40, %v87_v42 }
  0xa8   :  { %v88_v49 = vrot.slane %v51_v41, %v87_v42 }
  0xa9   :  { %v113_v57 = vsel %vm89_vm3, %v112_v48, %v108_v53 }
  0xaa   :  { %v66_v46 = vpop.xlane.xlu1 %65  ;;  %v90_v58 = vsel %vm89_vm3, %v88_v49, %v83_v54 }
  0xab   :  { %v54_v47 = vpop.xlane.xlu0 %53  ;;  %v117_v51 = vrot.slane %v66_v46, %v94_v44 }
  0xac   :  { %v95_v52 = vrot.slane %v54_v47, %v94_v44 }
  0xad   :  { %v118_v61 = vsel %vm96_vm4, %v117_v51, %v113_v57 }
  0xae   :  { %v69_v55 = vpop.xlane.xlu1 %68  ;;  %v97_v62 = vsel %vm96_vm4, %v95_v52, %v90_v58 }
  0xaf   :  { %v57_v56 = vpop.xlane.xlu0 %56  ;;  %v122_v59 = vrot.slane %v69_v55, %v101_v50 }
  0xb0   :  { %v102_v60 = vrot.slane %v57_v56, %v101_v50 }
  0xb1   :  { %v123_v0 = vsel %vm103_vm5, %v122_v59, %v118_v61 }
  0xb2   :  { %v104_v1 = vsel %vm103_vm5, %v102_v60, %v97_v62  ;;  %v136_v3 = vpop.xlane.xlu1 %135 }
  0xb3   :  { %v125_v2 = vsel %vm124_vm6, %v123_v0, %v104_v1  ;;  %v133_v4 = vpop.xlane.xlu0 %132  ;;  %v170_v10 = vrot.slane %v136_v3, %v87_v42 }
  0xb4   :  { %v127_v5 = vadd.f32 %v125_v2, %v44_v63  ;;  %v166_v11 = vrot.slane %v133_v4, %v82_v45 }
  0xb6   :  { %129 = vst.msk [vmem:[#allocation2] sm:$0x3] %vm33_vm1, %v127_v5  ;;  %v148_v6 = vpop.xlane.xlu1 %147  ;;  %v171_v20 = vsel %vm89_vm3, %v170_v10, %v166_v11 }
  0xb7   :  { %v145_v7 = vpop.xlane.xlu0 %144  ;;  %v189_v12 = vrot.slane %v148_v6, %v87_v42 }
  0xb8   :  { %v185_v13 = vrot.slane %v145_v7, %v82_v45 }
  0xba   :  { %v151_v8 = vpop.xlane.xlu1 %150  ;;  %v190_v21 = vsel %vm89_vm3, %v189_v12, %v185_v13 }
  0xbb   :  { %v139_v9 = vpop.xlane.xlu0 %138  ;;  %v194_v14 = vrot.slane %v151_v8, %v94_v44 }
  0xbc   :  { %v175_v15 = vrot.slane %v139_v9, %v94_v44 }
  0xbd   :  { %v208_v16 = vld [vmem:[#allocation2] sm:$0x3]  ;;  %v195_v25 = vsel %vm96_vm4, %v194_v14, %v190_v21 }
  0xbe   :  { %v209_v17 = vmul.f32 0.015625, %v208_v16  ;;  %v154_v18 = vpop.xlane.xlu1 %153  ;;  %v176_v26 = vsel %vm96_vm4, %v175_v15, %v171_v20 }
  0xbf   :  { %v142_v19 = vpop.xlane.xlu0 %141  ;;  %v199_v23 = vrot.slane %v154_v18, %v101_v50 }
  0xc0   :  { %v180_v24 = vrot.slane %v142_v19, %v101_v50  ;;  %493 = vmatmul.mubr.msk.f32.vlgmr.msra.gmra.mrb[0].mxu0 %vm215_vm7, %v209_v17 }
  0xc1   :  { %508 = vmatprep.mubr.msk.f32.mxu0 %vm589_vm2, %v586_v22  ;;  %v200_v28 = vsel %vm103_vm5, %v199_v23, %v195_v25  ;;  %507 = vmatpush3.msk.msra.mxu0 %vm370_vm8, %v365_v33 }
  0xc2   :  { %v181_v29 = vsel %vm103_vm5, %v180_v24, %v176_v26 }
  0xc3   :  { %v201_v30 = vsel %vm124_vm6, %v200_v28, %v181_v29 }
  0xc4   :  { %v203_v31 = vmax.f32 %v130_v27, %v201_v30 }
  0xc6   :  { %204 = vst.msk [vmem:[#allocation3] sm:$0x3] %vm33_vm1, %v203_v31 }
  0xcd   :  { %v210_v32 = vld [vmem:[#allocation3] sm:$0x3] }
  0xce   :  { %504 = vmatmul.mubr.msk.f32.vlgmr.msra.gmra.mrb[0].mxu1 %vm215_vm7, %v210_v32 }
 0x193   :  { %v285_v34 = vpop.f32.mrb[0].mxu0 }
 0x194   :  { %v494_v22 = vpop.f32.mrb[1].mxu0  ;;  %v289_v36 = vmax.f32 %v285_v34, 0.0 }
 0x1a1   :  { %v359_v35 = vpop.f32.mrb[0].mxu1 }
 0x1a2   :  { %v363_v37 = vmax.f32 %v359_v35, 0.0  ;;  %v505_v38 = vpop.f32.mrb[1].mxu1 }
 0x1a4   :  { %v364_v39 = vadd.f32 %v363_v37, %v289_v36 }
 0x1a6   :  { %509 = vmatmul.mubr.msk.f32.vlgmr.msra.gmra.mrb[2].mxu0 %vm366_vm9, %v364_v39 }
 0x279   :  { %v440_v40 = vpop.f32.mrb[2].mxu0 }
 0x27a   :  { %v471_v41 = vmul.f32 -1.442695, %v440_v40  ;;  %v510_v42 = vpop.f32.mrb[3].mxu0 }
 0x27c   :  { %531 = vpow2.f32 %v471_v41 }
 0x286   :  { %v532_v43 = vpop.eup %531 }
 0x287   :  { %v447_v44 = vadd.f32 1.0, %v532_v43 }
 0x289   :  { %533 = vrcp.f32 %v447_v44 }
 0x293   :  { %v534_v45 = vpop.eup %533 }
 0x294   :  { %451 = vst.msk [vmem:[#allocation7] sm:$0x3] %vm450_vm10, %v534_v45 }
 0x295   :  { %568 = shalt.err (!%p565_p12)
}
 0x296   :  { %s569_s11 = scalar_lea.hbm %s697_s3, 32 }
 0x297   :  { %p570_p13 = scmp.ne.s32.totalorder %s697_s3, %s569_s11  ;;  %p573_p0 = scmp.lt.u32.totalorder %s569_s11, %s697_s3 }
 0x299   :  { %p575_p1 = pnand %p573_p0, %p570_p13 }
 0x29b   :  { %578 = shalt.err (!%p575_p1)
}
 0x29c   :  { %461 = dma.vmem_to_hbm [thread:$0]  %s459_s2, 32, %s697_s3, [#allocation6]  }
 0x29d   :  { %581 = dma.done.wait [#allocation6], 32  }
 0x29e   :  { %582 = vsyncadd [#allocation6], 4294967264 }
 0x29f   :  { %465 = vsyncpa [#allocation5], 1 }
 0x2a0   :  { %466 = vsyncpa [#allocation6], 1 }

</bundles_post_ra>
